<compile_context>
chip_gen: v6e
topology: v6e:2x2x1
jax: 0.10.0
libtpu: 0.0.40
codegen_flags: <defaults>
</compile_context>

<pallas_src>
import jax
import jax.numpy as jnp
from jax.experimental import pallas as pl
from jax.experimental.pallas import tpu as pltpu

D = 8
SIZE_VERTEX = 512   # synthetic vocabulary size (multiple of 128 -> lane-dense output)
BATCH = 128


def deepwalk_kernel(hidden_ref, phi2_ref, out_ref):
    """out_tile = hidden_tile @ phi2, computed on the VPU.

    Contraction depth is d = 8, far too shallow to pay MXU push/pop latency on
    a 128/256-deep systolic array, so the matmul is unrolled into d broadcast
    multiply-adds per output vreg (pure VALU work; no MXU on the critical path).
    """
    d = phi2_ref.shape[0]
    acc = hidden_ref[:, 0:1] * phi2_ref[0:1, :]
    for k in range(1, d):                      # d == 8: tiny static unroll
        acc = acc + hidden_ref[:, k:k + 1] * phi2_ref[k:k + 1, :]
    out_ref[...] = acc.astype(out_ref.dtype)


@jax.jit
def deepwalk_forward_from_indices(idx, phi, phi2):
    """out[b] = phi[idx[b]] @ phi2  (DeepWalk forward given vertex indices)."""
    V, d = phi.shape
    assert phi2.shape == (d, V)
    B = idx.shape[0]
    idx = idx.astype(jnp.int32)

    # Pad the batch to a sublane multiple; padded rows are sliced off below.
    Bp = ((B + 7) // 8) * 8
    if Bp != B:
        idx = jnp.pad(idx, (0, Bp - B))

    # one_hot @ phi is a row gather of phi; do it as a tiny XLA gather in the
    # wrapper (Bp x d f32 = a few KiB) so phi -- and its lane-sparse (V, 8)
    # strided DMA -- never enters the kernel.
    hidden = jnp.take(phi, idx, axis=0)        # (Bp, d) float32

    # At most 2 grid steps: two "parallel" batch tiles when the batch is big
    # enough (lets v7x's second TensorCore take half the batch); otherwise a
    # single step.  Working set (hidden + phi2 + out, double-buffered) is well
    # under 1 MiB -- VMEM is a non-issue on every generation.
    nbt = 2 if (Bp >= 128 and Bp % 16 == 0) else 1
    tb = Bp // nbt

    out = pl.pallas_call(
        deepwalk_kernel,
        out_shape=jax.ShapeDtypeStruct((Bp, V), jnp.float32),
        grid=(nbt,),
        in_specs=[
            pl.BlockSpec((tb, d), lambda i: (i, 0)),   # gathered activations
            pl.BlockSpec((d, V), lambda i: (0, 0)),    # phi2: fetched once, reused
        ],
        out_specs=pl.BlockSpec((tb, V), lambda i: (i, 0)),  # lane-dense V-wide stores
        compiler_params=pltpu.CompilerParams(
            dimension_semantics=("parallel",)),
    )(hidden, phi2)

    return out[:B]


@jax.jit
def deepwalk_forward(one_hot, phi, phi2):
    """Forward pass of the DeepWalk model: one_hot @ phi @ phi2.

    DeepWalk feeds strictly one-hot rows, so the first matmul is exactly a row
    pick of phi; we recover the indices and dispatch to the index-based path.
    Callers that already hold integer vertex indices should call
    `deepwalk_forward_from_indices` directly and skip the (B, V) argmax.
    """
    idx = jnp.argmax(one_hot, axis=-1).astype(jnp.int32)
    return deepwalk_forward_from_indices(idx, phi, phi2)


if __name__ == "__main__":
    key = jax.random.PRNGKey(0)
    k_phi, k_phi2, k_idx = jax.random.split(key, 3)

    # Parameters: deterministic, uniform [0, 1) like torch.rand.
    phi = jax.random.uniform(k_phi, (SIZE_VERTEX, D), dtype=jnp.float32)
    phi2 = jax.random.uniform(k_phi2, (D, SIZE_VERTEX), dtype=jnp.float32)

    # Input: batch of one-hot vertex indicators, shape (BATCH, SIZE_VERTEX).
    idx = jax.random.randint(k_idx, (BATCH,), 0, SIZE_VERTEX)
    one_hot = jax.nn.one_hot(idx, SIZE_VERTEX, dtype=jnp.float32)

    out = deepwalk_forward(one_hot, phi, phi2)
    out = jax.block_until_ready(out)

    # Reference check in plain JAX (full-precision dots).
    hidden_ref = jnp.dot(one_hot, phi, precision=jax.lax.Precision.HIGHEST)
    ref = jnp.dot(hidden_ref, phi2, precision=jax.lax.Precision.HIGHEST)
    assert out.shape == (BATCH, SIZE_VERTEX)
    assert jnp.allclose(out, ref, atol=1e-5, rtol=1e-5), float(
        jnp.max(jnp.abs(out - ref)))

    print("KERNEL_OK")
</pallas_src>

<mosaic_0001>
module attributes {stable_mosaic.version = 11 : i64} {
  func.func @deepwalk_kernel(%arg0: i32, %arg1: memref<64x8xf32, #tpu.memory_space<vmem>>, %arg2: memref<8x512xf32, #tpu.memory_space<vmem>>, %arg3: memref<64x512xf32, #tpu.memory_space<vmem>>) attributes {dimension_semantics = [#tpu.dimension_semantics<parallel>], iteration_bounds = array<i64: 2>, scalar_prefetch = 0 : i64, scratch_operands = 0 : i64, tpu.core_type = #tpu.core_type<tc>, window_params = [{transform_indices = @transform_0, window_bounds = array<i64: 64, 8>}, {pipeline_mode = #tpu.pipeline_mode<synchronous>, transform_indices = @transform_1, window_bounds = array<i64: 8, 512>}, {transform_indices = @transform_2, window_bounds = array<i64: 64, 512>}]} {
    %c0 = arith.constant 0 : index
    %c0_0 = arith.constant 0 : index
    %0 = vector.load %arg1[%c0, %c0_0] : memref<64x8xf32, #tpu.memory_space<vmem>>, vector<64x1xf32>
    %c0_1 = arith.constant 0 : index
    %c0_2 = arith.constant 0 : index
    %1 = vector.load %arg2[%c0_1, %c0_2] : memref<8x512xf32, #tpu.memory_space<vmem>>, vector<1x512xf32>
    %2 = vector.broadcast %0 : vector<64x1xf32> to vector<64x512xf32>
    %3 = vector.broadcast %1 : vector<1x512xf32> to vector<64x512xf32>
    %4 = arith.mulf %2, %3 : vector<64x512xf32>
    %c0_3 = arith.constant 0 : index
    %c1 = arith.constant 1 : index
    %5 = vector.load %arg1[%c0_3, %c1] : memref<64x8xf32, #tpu.memory_space<vmem>>, vector<64x1xf32>
    %c1_4 = arith.constant 1 : index
    %c0_5 = arith.constant 0 : index
    %6 = vector.load %arg2[%c1_4, %c0_5] : memref<8x512xf32, #tpu.memory_space<vmem>>, vector<1x512xf32>
    %7 = vector.broadcast %5 : vector<64x1xf32> to vector<64x512xf32>
    %8 = vector.broadcast %6 : vector<1x512xf32> to vector<64x512xf32>
    %9 = arith.mulf %7, %8 : vector<64x512xf32>
    %10 = arith.addf %4, %9 : vector<64x512xf32>
    %c0_6 = arith.constant 0 : index
    %c2 = arith.constant 2 : index
    %11 = vector.load %arg1[%c0_6, %c2] : memref<64x8xf32, #tpu.memory_space<vmem>>, vector<64x1xf32>
    %c2_7 = arith.constant 2 : index
    %c0_8 = arith.constant 0 : index
    %12 = vector.load %arg2[%c2_7, %c0_8] : memref<8x512xf32, #tpu.memory_space<vmem>>, vector<1x512xf32>
    %13 = vector.broadcast %11 : vector<64x1xf32> to vector<64x512xf32>
    %14 = vector.broadcast %12 : vector<1x512xf32> to vector<64x512xf32>
    %15 = arith.mulf %13, %14 : vector<64x512xf32>
    %16 = arith.addf %10, %15 : vector<64x512xf32>
    %c0_9 = arith.constant 0 : index
    %c3 = arith.constant 3 : index
    %17 = vector.load %arg1[%c0_9, %c3] : memref<64x8xf32, #tpu.memory_space<vmem>>, vector<64x1xf32>
    %c3_10 = arith.constant 3 : index
    %c0_11 = arith.constant 0 : index
    %18 = vector.load %arg2[%c3_10, %c0_11] : memref<8x512xf32, #tpu.memory_space<vmem>>, vector<1x512xf32>
    %19 = vector.broadcast %17 : vector<64x1xf32> to vector<64x512xf32>
    %20 = vector.broadcast %18 : vector<1x512xf32> to vector<64x512xf32>
    %21 = arith.mulf %19, %20 : vector<64x512xf32>
    %22 = arith.addf %16, %21 : vector<64x512xf32>
    %c0_12 = arith.constant 0 : index
    %c4 = arith.constant 4 : index
    %23 = vector.load %arg1[%c0_12, %c4] : memref<64x8xf32, #tpu.memory_space<vmem>>, vector<64x1xf32>
    %c4_13 = arith.constant 4 : index
    %c0_14 = arith.constant 0 : index
    %24 = vector.load %arg2[%c4_13, %c0_14] : memref<8x512xf32, #tpu.memory_space<vmem>>, vector<1x512xf32>
    %25 = vector.broadcast %23 : vector<64x1xf32> to vector<64x512xf32>
    %26 = vector.broadcast %24 : vector<1x512xf32> to vector<64x512xf32>
    %27 = arith.mulf %25, %26 : vector<64x512xf32>
    %28 = arith.addf %22, %27 : vector<64x512xf32>
    %c0_15 = arith.constant 0 : index
    %c5 = arith.constant 5 : index
    %29 = vector.load %arg1[%c0_15, %c5] : memref<64x8xf32, #tpu.memory_space<vmem>>, vector<64x1xf32>
    %c5_16 = arith.constant 5 : index
    %c0_17 = arith.constant 0 : index
    %30 = vector.load %arg2[%c5_16, %c0_17] : memref<8x512xf32, #tpu.memory_space<vmem>>, vector<1x512xf32>
    %31 = vector.broadcast %29 : vector<64x1xf32> to vector<64x512xf32>
    %32 = vector.broadcast %30 : vector<1x512xf32> to vector<64x512xf32>
    %33 = arith.mulf %31, %32 : vector<64x512xf32>
    %34 = arith.addf %28, %33 : vector<64x512xf32>
    %c0_18 = arith.constant 0 : index
    %c6 = arith.constant 6 : index
    %35 = vector.load %arg1[%c0_18, %c6] : memref<64x8xf32, #tpu.memory_space<vmem>>, vector<64x1xf32>
    %c6_19 = arith.constant 6 : index
    %c0_20 = arith.constant 0 : index
    %36 = vector.load %arg2[%c6_19, %c0_20] : memref<8x512xf32, #tpu.memory_space<vmem>>, vector<1x512xf32>
    %37 = vector.broadcast %35 : vector<64x1xf32> to vector<64x512xf32>
    %38 = vector.broadcast %36 : vector<1x512xf32> to vector<64x512xf32>
    %39 = arith.mulf %37, %38 : vector<64x512xf32>
    %40 = arith.addf %34, %39 : vector<64x512xf32>
    %c0_21 = arith.constant 0 : index
    %c7 = arith.constant 7 : index
    %41 = vector.load %arg1[%c0_21, %c7] : memref<64x8xf32, #tpu.memory_space<vmem>>, vector<64x1xf32>
    %c7_22 = arith.constant 7 : index
    %c0_23 = arith.constant 0 : index
    %42 = vector.load %arg2[%c7_22, %c0_23] : memref<8x512xf32, #tpu.memory_space<vmem>>, vector<1x512xf32>
    %43 = vector.broadcast %41 : vector<64x1xf32> to vector<64x512xf32>
    %44 = vector.broadcast %42 : vector<1x512xf32> to vector<64x512xf32>
    %45 = arith.mulf %43, %44 : vector<64x512xf32>
    %46 = arith.addf %40, %45 : vector<64x512xf32>
    %c0_24 = arith.constant 0 : index
    %c0_25 = arith.constant 0 : index
    %47 = vector.load %arg3[%c0_24, %c0_25] : memref<64x512xf32, #tpu.memory_space<vmem>>, vector<64x512xf32>
    tpu.vector_store %arg3[%c0_24, %c0_25], %46 {strides = array<i32>} : memref<64x512xf32, #tpu.memory_space<vmem>>, vector<64x512xf32>,
    return
  }
  func.func @transform_0(%arg0: i32) -> (i32, i32) {
    %c0_i32 = arith.constant 0 : i32
    %c0_i32_0 = arith.constant 0 : i32
    return %arg0, %c0_i32 : i32, i32
  }
  func.func @transform_1(%arg0: i32) -> (i32, i32) {
    %c0_i32 = arith.constant 0 : i32
    %c0_i32_0 = arith.constant 0 : i32
    %c0_i32_1 = arith.constant 0 : i32
    return %c0_i32, %c0_i32_0 : i32, i32
  }
  func.func @transform_2(%arg0: i32) -> (i32, i32) {
    %c0_i32 = arith.constant 0 : i32
    %c0_i32_0 = arith.constant 0 : i32
    return %arg0, %c0_i32 : i32, i32
  }
}

</mosaic_0001>

<bundles_post_ra>
// kernel: deepwalk_forward_from_indices.1
= control target key start
LH: loop header
LB: loop body
LE: loop exit
PB: predicated region body
PF: predicated region fallthrough
CT: control target
= control target key end

     0   :  { %7 = vsyncpa [#allocation3], 0  ;;  %s2456_s0 = inlined_call_operand.vmem [shape: f32[128,8], index: 0, kind: input, shape index: {}]   ;;  %s2457_s1 = inlined_call_operand.vmem [shape: f32[8,512], index: 1, kind: input, shape index: {}]   ;;  %s2458_s2 = inlined_call_operand.hbm [shape: f32[128,512], index: 2, kind: output, shape index: {}]  }
   0x1   :  { %9 = vsyncpa [#allocation3 + $0x1], 0  ;;  %s1364_s9 = smov 0   ;;  %s1366_s10 = smov 0  }
   0x2   :  { %s1368_s11 = smov 0   ;;  %s1370_s12 = smov 0  }
   0x3 LB: > { %s1385_s13 = sadd.s32 4294967295, %s1336_s12   ;;  %s1189_s14 = sadd.s32 4294967294, %s1336_s12   ;;  %s1336_s12 = sphi %s1370_s12, %s2523_s12   ;;  %s1332_s11 = sphi %s1368_s11, %s2522_s11   ;;  %s1328_s10 = sphi %s1366_s10, %s2521_s10   ;;  %s1324_s9 = sphi %s1364_s9, %s2520_s9  }
   0x4   : > { %s1389_s15 = sadd.s32 1, %s1336_s12   ;;  %s69_s16 = sadd.s32 1, %s1332_s11 }
   0x5   : > { %s66_s17 = ssub.s32 %s1336_s12, %s1389_s15  ;;  %p79_p0 = scmp.ne.s32.totalorder %s1332_s11, %s1328_s10 }
   0x6   : > { %p67_p1 = scmp.eq.s32.totalorder %s66_s17, 0  ;;  %p80_p2 = scmp.eq.s32.totalorder %s1385_s13, 1 }
   0x7   : > { %p85_p3 = scmp.ne.s32.totalorder %s1328_s10, %s1324_s9  ;;  %p86_p4 = scmp.eq.s32.totalorder %s1189_s14, 1 }
   0x8   : > { %s1400_s18 = scalar_select %p67_p1, %s1332_s11, %s69_s16  }
   0x9   : > { %p1402_p5 = por %p80_p2, %p79_p0  ;;  %p1406_p6 = por %p86_p4, %p85_p3 }
   0xa   : > { %p1192_p7 = scmp.ge.s32.totalorder %s1336_s12, 1  ;;  %p116_p8 = scmp.lt.s32.totalorder %s1336_s12, 3 }
   0xc   : > { %p117_p9 = pnand %p1192_p7, %p116_p8 }
   0xe   : > { %120 = sbr.rel (%p117_p9) target bundleno = 314 (0x13a), region = 28 }
  0x13   : > { %s1194_s21 = sshll.u32 %s1385_s13, 3  ;;  %v1338_v0 = vmov 0   ;;  %v1339_v9 = vmov 1   ;;  %v1340_v10 = vmov 2   ;;  %v1341_v11 = vmov 3   ;;  %s135_s23 = sand.u32 1, %s1328_s10  }
  0x14   : > { %1261 = vset.pattern.permute.xlu1 %v1338_v0  ;;  %1260 = vset.pattern.permute.xlu0 %v1338_v0  ;;  %p139_p10 = scmp.lt.s32.totalorder %s1194_s21, 15  ;;  %v1342_v12 = vmov 4   ;;  %v1343_v13 = vmov 5   ;;  %v1344_v14 = vmov 6   ;;  %v1345_v15 = vmov 7   ;;  %s1193_s24 = sshll.u32 %s135_s23, 8 }
  0x15   : > { %v195_v16 = vlaneseq  ;;  %v153_v24 = vld [vmem:[%s2457_s1] ss:$8 sm:$0xf]  ;;  %v1196_v27 = vld [vmem:[%s2457_s1 + $0x1] ss:$8 sm:$0xf] }
  0x16   : > { %s2525_s21 = smov (!%p139_p10, %s1194_s21), 15  ;;  %v1197_v32 = vld [vmem:[%s2457_s1 + $0x2] ss:$8 sm:$0xf]  ;;  %s1210_s26 = sshll.u32 %s1385_s13, 12 }
  0x17   : > { %s1195_s22 = sshll.u32 %s2525_s21, 3  ;;  %v196_v17 = vshrl.u32 %v195_v16, 7  ;;  %s2406_s29 = scalar_lea.hbm %s2458_s2, %s1210_s26 }
  0x18   : > { %s142_s25 = scalar_lea.vmem %s2456_s0, %s1195_s22  ;;  %s2416_s30 = scalar_lea.sflag [#allocation3], %s135_s23 }
  0x19   : > { %v1416_v1 = vld [vmem:[%s142_s25 + $0x10] sm:$0xff]  ;;  %v1418_v2 = vld [vmem:[%s142_s25] sm:$0xff]  ;;  %v1422_v3 = vld [vmem:[%s142_s25 + $0x18] sm:$0xff]  ;;  %v1491_v20 = vsub.s32 0, %v196_v17  ;;  %v1493_v21 = vsub.s32 1, %v196_v17  ;;  %v1495_v22 = vsub.s32 2, %v196_v17 }
  0x1a   : > { %166 = vperm.xlu1 %1261, %v1416_v1   ;;  %156 = vperm.xlu0 %1260, %v1418_v2   ;;  %v1424_v4 = vld [vmem:[%s142_s25 + $0x8] sm:$0xff]  ;;  %v1430_v6 = vld [vmem:[%s142_s25 + $0x20] sm:$0xff]  ;;  %v1434_v7 = vld [vmem:[%s142_s25 + $0x38] sm:$0xff]  ;;  %v1497_v23 = vsub.s32 3, %v196_v17  ;;  %s1346_s4 = smov [#allocation2]  }
  0x1b   : > { %v1428_v5 = vld [vmem:[%s142_s25 + $0x28] sm:$0xff]  ;;  %v1436_v8 = vld [vmem:[%s142_s25 + $0x30] sm:$0xff]  ;;  %v198_v28 = vrot.slane %v153_v24, %v1491_v20  ;;  %v202_v29 = vrot.slane %v153_v24, %v1493_v21  ;;  %v206_v30 = vrot.slane %v153_v24, %v1495_v22  ;;  %v1515_v35 = vrot.slane %v1196_v27, %v1491_v20  ;;  %s2267_s25 = scalar_lea.vmem [#allocation2], %s1193_s24  ;;  %s1280_s5 = sshll.u32 %s1346_s4, 4  ;;  %s1281_s5 = int_to_ptr.vmem [resolvable:$false] %s1280_s5 }
  0x1c   : > { %v210_v31 = vrot.slane %v153_v24, %v1497_v23  ;;  %v1518_v36 = vrot.slane %v1196_v27, %v1493_v21  ;;  %v1521_v37 = vrot.slane %v1196_v27, %v1495_v22  ;;  %v1524_v38 = vrot.slane %v1196_v27, %v1497_v23  ;;  %s1127_s27 = sshll.u32 %s2267_s25, 4  ;;  %s1282_s6 = scalar_lea.vmem %s1281_s5, 8192  ;;  %s2408_s27 = int_to_ptr.vmem [resolvable:$true] %s1127_s27 }
  0x1d   : > { %v1527_v39 = vrot.slane %v1197_v32, %v1491_v20  ;;  %v1530_v40 = vrot.slane %v1197_v32, %v1493_v21  ;;  %v1533_v41 = vrot.slane %v1197_v32, %v1495_v22  ;;  %v1536_v42 = vrot.slane %v1197_v32, %v1497_v23  ;;  %s1276_s3 = scalar_lea.vmem %s2408_s27, 4096  ;;  %p1283_p0 = scmp.lt.s32.totalorder %s2408_s27, %s1281_s5 }
  0x1e   : > { %171 = vperm.xlu1 %1261, %v1422_v3   ;;  %161 = vperm.xlu0 %1260, %v1424_v4   ;;  %p1277_p11 = scmp.ne.s32.totalorder %s2408_s27, %s1276_s3  ;;  %p1284_p1 = scmp.lt.s32.totalorder %s1282_s6, %s1276_s3 }
  0x20   : > { %p1278_p12 = pnand %p1277_p11, %p1402_p5  ;;  %p1285_p2 = por %p1284_p1, %p1283_p0 }
  0x22   : > { %181 = vperm.xlu1 %1261, %v1428_v5   ;;  %176 = vperm.xlu0 %1260, %v1430_v6   ;;  %p1279_p13 = pneg %p1278_p12 }
  0x24   : > { %p1286_p3 = pnand %p1285_p2, %p1279_p13 }
  0x26   : > { %191 = vperm.xlu1 %1261, %v1434_v7   ;;  %186 = vperm.xlu0 %1260, %v1436_v8  }
  0x2a   : > { %1263 = vset.pattern.permute.xlu1 %v1339_v9  ;;  %1262 = vset.pattern.permute.xlu0 %v1339_v9 }
  0x2b   : > { %254 = vperm.xlu1 %1263, %v1424_v4   ;;  %250 = vperm.xlu0 %1262, %v1418_v2  }
  0x2f   : > { %258 = vperm.xlu1 %1263, %v1416_v1   ;;  %262 = vperm.xlu0 %1262, %v1422_v3  }
  0x33   : > { %266 = vperm.xlu1 %1263, %v1430_v6   ;;  %270 = vperm.xlu0 %1262, %v1428_v5  }
  0x37   : > { %274 = vperm.xlu1 %1263, %v1436_v8   ;;  %278 = vperm.xlu0 %1262, %v1434_v7  }
  0x3b   : > { %1264 = vset.pattern.permute.xlu1 %v1340_v10  ;;  %1265 = vset.pattern.permute.xlu0 %v1340_v10 }
  0x3c   : > { %369 = vperm.xlu1 %1264, %v1418_v2   ;;  %373 = vperm.xlu0 %1265, %v1424_v4  }
  0x40   : > { %377 = vperm.xlu1 %1264, %v1416_v1   ;;  %385 = vperm.xlu0 %1265, %v1430_v6  }
  0x44   : > { %381 = vperm.xlu1 %1264, %v1422_v3   ;;  %393 = vperm.xlu0 %1265, %v1436_v8  }
  0x48   : > { %389 = vperm.xlu1 %1264, %v1428_v5   ;;  %1266 = vset.pattern.permute.xlu0 %v1341_v11 }
  0x49   : > { %488 = vperm.xlu0 %1266, %v1418_v2  }
  0x4c   : > { %397 = vperm.xlu1 %1264, %v1434_v7  }
  0x4d   : > { %500 = vperm.xlu0 %1266, %v1422_v3  }
  0x50   : > { %1267 = vset.pattern.permute.xlu1 %v1341_v11 }
  0x51   : > { %492 = vperm.xlu1 %1267, %v1424_v4   ;;  %508 = vperm.xlu0 %1266, %v1428_v5  }
  0x55   : > { %496 = vperm.xlu1 %1267, %v1416_v1   ;;  %516 = vperm.xlu0 %1266, %v1434_v7  }
  0x59   : > { %504 = vperm.xlu1 %1267, %v1430_v6   ;;  %1269 = vset.pattern.permute.xlu0 %v1342_v12 }
  0x5a   : > { %611 = vperm.xlu0 %1269, %v1424_v4  }
  0x5d   : > { %512 = vperm.xlu1 %1267, %v1436_v8  }
  0x5e   : > { %623 = vperm.xlu0 %1269, %v1430_v6  }
  0x61   : > { %1268 = vset.pattern.permute.xlu1 %v1342_v12 }
  0x62   : > { %607 = vperm.xlu1 %1268, %v1418_v2   ;;  %631 = vperm.xlu0 %1269, %v1436_v8  }
  0x66   : > { %615 = vperm.xlu1 %1268, %v1416_v1   ;;  %1270 = vset.pattern.permute.xlu0 %v1343_v13 }
  0x67   : > { %726 = vperm.xlu0 %1270, %v1418_v2  }
  0x6a   : > { %619 = vperm.xlu1 %1268, %v1422_v3  }
  0x6b   : > { %738 = vperm.xlu0 %1270, %v1422_v3  }
  0x6e   : > { %627 = vperm.xlu1 %1268, %v1428_v5  }
  0x6f   : > { %746 = vperm.xlu0 %1270, %v1428_v5  }
  0x72   : > { %635 = vperm.xlu1 %1268, %v1434_v7  }
  0x73   : > { %754 = vperm.xlu0 %1270, %v1434_v7  }
  0x76   : > { %1271 = vset.pattern.permute.xlu1 %v1343_v13 }
  0x77   : > { %730 = vperm.xlu1 %1271, %v1424_v4   ;;  %1273 = vset.pattern.permute.xlu0 %v1344_v14 }
  0x78   : > { %849 = vperm.xlu0 %1273, %v1424_v4  }
  0x7b   : > { %734 = vperm.xlu1 %1271, %v1416_v1  }
  0x7c   : > { %861 = vperm.xlu0 %1273, %v1430_v6  }
  0x7f   : > { %742 = vperm.xlu1 %1271, %v1430_v6  }
  0x80   : > { %869 = vperm.xlu0 %1273, %v1436_v8  }
  0x83   : > { %750 = vperm.xlu1 %1271, %v1436_v8  }
  0x84   : > { %1274 = vset.pattern.permute.xlu0 %v1345_v15 }
  0x85   : > { %964 = vperm.xlu0 %1274, %v1418_v2  }
  0x87   : > { %1272 = vset.pattern.permute.xlu1 %v1344_v14 }
  0x88   : > { %845 = vperm.xlu1 %1272, %v1418_v2  }
  0x89   : > { %976 = vperm.xlu0 %1274, %v1422_v3  }
  0x8c   : > { %853 = vperm.xlu1 %1272, %v1416_v1  }
  0x8d   : > { %984 = vperm.xlu0 %1274, %v1428_v5  }
  0x90   : > { %857 = vperm.xlu1 %1272, %v1422_v3  }
  0x91   : > { %992 = vperm.xlu0 %1274, %v1434_v7  }
  0x94   : > { %865 = vperm.xlu1 %1272, %v1428_v5  }
  0x95   : > { %v167_v18 = vpop.permute.xlu1 %166  ;;  %v157_v19 = vpop.permute.xlu0 %156 }
  0x96   : > { %v1538_v43 = vmul.f32 %v198_v28, %v167_v18  ;;  %v1540_v44 = vmul.f32 %v202_v29, %v167_v18  ;;  %v1542_v45 = vmul.f32 %v206_v30, %v167_v18  ;;  %v1544_v46 = vmul.f32 %v210_v31, %v167_v18 }
  0x97   : > { %v215_v47 = vmul.f32 %v198_v28, %v157_v19  ;;  %v216_v48 = vmul.f32 %v202_v29, %v157_v19  ;;  %v217_v49 = vmul.f32 %v206_v30, %v157_v19  ;;  %v218_v50 = vmul.f32 %v210_v31, %v157_v19 }
  0x98   : > { %873 = vperm.xlu1 %1272, %v1434_v7  }
  0x99   : > { %v172_v25 = vpop.permute.xlu1 %171  ;;  %v162_v26 = vpop.permute.xlu0 %161 }
  0x9a   : > { %v227_v51 = vmul.f32 %v198_v28, %v172_v25  ;;  %v228_v52 = vmul.f32 %v202_v29, %v172_v25  ;;  %v229_v53 = vmul.f32 %v206_v30, %v172_v25  ;;  %v230_v54 = vmul.f32 %v210_v31, %v172_v25 }
  0x9b   : > { %v219_v57 = vmul.f32 %v198_v28, %v162_v26  ;;  %v220_v58 = vmul.f32 %v202_v29, %v162_v26  ;;  %v221_v59 = vmul.f32 %v206_v30, %v162_v26  ;;  %v222_v60 = vmul.f32 %v210_v31, %v162_v26 }
  0x9c   : > { %1275 = vset.pattern.permute.xlu1 %v1345_v15 }
  0x9d   : > { %v182_v33 = vpop.permute.xlu1 %181  ;;  %968 = vperm.xlu1 %1275, %v1424_v4   ;;  %v177_v34 = vpop.permute.xlu0 %176 }
  0x9e   : > { %v1547_v61 = vmul.f32 %v198_v28, %v182_v33  ;;  %v1549_v62 = vmul.f32 %v202_v29, %v182_v33  ;;  %v1551_v63 = vmul.f32 %v206_v30, %v182_v33  ;;  %v1553_v0 = vmul.f32 %v210_v31, %v182_v33 }
  0x9f   : > { %v231_v2 = vmul.f32 %v198_v28, %v177_v34  ;;  %v232_v3 = vmul.f32 %v202_v29, %v177_v34  ;;  %v233_v4 = vmul.f32 %v206_v30, %v177_v34  ;;  %v234_v5 = vmul.f32 %v210_v31, %v177_v34 }
  0xa1   : > { %v192_v55 = vpop.permute.xlu1 %191  ;;  %972 = vperm.xlu1 %1275, %v1416_v1   ;;  %v187_v56 = vpop.permute.xlu0 %186 }
  0xa2   : > { %v1555_v7 = vmul.f32 %v198_v28, %v192_v55  ;;  %v1557_v1 = vmul.f32 %v202_v29, %v192_v55  ;;  %v1559_v9 = vmul.f32 %v206_v30, %v192_v55  ;;  %v1561_v10 = vmul.f32 %v210_v31, %v192_v55 }
  0xa3   : > { %v1564_v11 = vmul.f32 %v198_v28, %v187_v56  ;;  %v1566_v12 = vmul.f32 %v202_v29, %v187_v56  ;;  %v1568_v13 = vmul.f32 %v206_v30, %v187_v56  ;;  %v1570_v14 = vmul.f32 %v210_v31, %v187_v56 }
  0xa5   : > { %980 = vperm.xlu1 %1275, %v1430_v6  }
  0xa6   : > { %v255_v15 = vpop.permute.xlu1 %254  ;;  %v251_v16 = vpop.permute.xlu0 %250 }
  0xa7   : > { %v306_v17 = vmul.f32 %v1515_v35, %v255_v15  ;;  %v307_v18 = vmul.f32 %v1518_v36, %v255_v15  ;;  %v308_v19 = vmul.f32 %v1521_v37, %v255_v15  ;;  %v309_v24 = vmul.f32 %v1524_v38, %v255_v15 }
  0xa8   : > { %v302_v6 = vmul.f32 %v1515_v35, %v251_v16  ;;  %v303_v25 = vmul.f32 %v1518_v36, %v251_v16  ;;  %v304_v26 = vmul.f32 %v1521_v37, %v251_v16  ;;  %v305_v27 = vmul.f32 %v1524_v38, %v251_v16 }
  0xa9   : > { %v1580_v28 = vadd.f32 %v306_v17, %v219_v57  ;;  %v1582_v29 = vadd.f32 %v307_v18, %v220_v58  ;;  %v1584_v30 = vadd.f32 %v308_v19, %v221_v59  ;;  %v1586_v31 = vadd.f32 %v309_v24, %v222_v60  ;;  %988 = vperm.xlu1 %1275, %v1436_v8  }
  0xaa   : > { %v1589_v32 = vadd.f32 %v302_v6, %v215_v47  ;;  %v1591_v33 = vadd.f32 %v303_v25, %v216_v48  ;;  %v1593_v34 = vadd.f32 %v304_v26, %v217_v49  ;;  %v1595_v55 = vadd.f32 %v305_v27, %v218_v50  ;;  %v259_v56 = vpop.permute.xlu1 %258  ;;  %v263_v15 = vpop.permute.xlu0 %262 }
  0xab   : > { %v310_v57 = vmul.f32 %v1515_v35, %v259_v56  ;;  %v311_v58 = vmul.f32 %v1518_v36, %v259_v56  ;;  %v312_v59 = vmul.f32 %v1521_v37, %v259_v56  ;;  %v313_v60 = vmul.f32 %v1524_v38, %v259_v56 }
  0xac   : > { %v314_v8 = vmul.f32 %v1515_v35, %v263_v15  ;;  %v315_v47 = vmul.f32 %v1518_v36, %v263_v15  ;;  %v316_v48 = vmul.f32 %v1521_v37, %v263_v15  ;;  %v317_v49 = vmul.f32 %v1524_v38, %v263_v15 }
  0xad   : > { %v1606_v50 = vadd.f32 %v310_v57, %v1538_v43  ;;  %v1609_v16 = vadd.f32 %v311_v58, %v1540_v44  ;;  %v1612_v17 = vadd.f32 %v312_v59, %v1542_v45  ;;  %v1615_v18 = vadd.f32 %v313_v60, %v1544_v46 }
  0xae   : > { %v1617_v19 = vadd.f32 %v314_v8, %v227_v51  ;;  %v1619_v24 = vadd.f32 %v315_v47, %v228_v52  ;;  %v1621_v6 = vadd.f32 %v316_v48, %v229_v53  ;;  %v1623_v25 = vadd.f32 %v317_v49, %v230_v54  ;;  %v267_v26 = vpop.permute.xlu1 %266  ;;  %v271_v43 = vpop.permute.xlu0 %270 }
  0xaf   : > { %v318_v27 = vmul.f32 %v1515_v35, %v267_v26  ;;  %v319_v44 = vmul.f32 %v1518_v36, %v267_v26  ;;  %v320_v45 = vmul.f32 %v1521_v37, %v267_v26  ;;  %v321_v56 = vmul.f32 %v1524_v38, %v267_v26 }
  0xb0   : > { %v322_v46 = vmul.f32 %v1515_v35, %v271_v43  ;;  %v323_v51 = vmul.f32 %v1518_v36, %v271_v43  ;;  %v324_v52 = vmul.f32 %v1521_v37, %v271_v43  ;;  %v325_v53 = vmul.f32 %v1524_v38, %v271_v43 }
  0xb1   : > { %v350_v54 = vadd.f32 %v318_v27, %v231_v2  ;;  %v351_v15 = vadd.f32 %v319_v44, %v232_v3  ;;  %v352_v57 = vadd.f32 %v320_v45, %v233_v4  ;;  %v353_v58 = vadd.f32 %v321_v56, %v234_v5 }
  0xb2   : > { %v1634_v59 = vadd.f32 %v322_v46, %v1547_v61  ;;  %v1637_v60 = vadd.f32 %v323_v51, %v1549_v62  ;;  %v1640_v8 = vadd.f32 %v324_v52, %v1551_v63  ;;  %v1643_v47 = vadd.f32 %v325_v53, %v1553_v0  ;;  %v275_v48 = vpop.permute.xlu1 %274  ;;  %v279_v49 = vpop.permute.xlu0 %278 }
  0xb3   : > { %v326_v26 = vmul.f32 %v1515_v35, %v275_v48  ;;  %v327_v2 = vmul.f32 %v1518_v36, %v275_v48  ;;  %v328_v3 = vmul.f32 %v1521_v37, %v275_v48  ;;  %v329_v61 = vmul.f32 %v1524_v38, %v275_v48 }
  0xb4   : > { %v330_v4 = vmul.f32 %v1515_v35, %v279_v49  ;;  %v331_v62 = vmul.f32 %v1518_v36, %v279_v49  ;;  %v332_v63 = vmul.f32 %v1521_v37, %v279_v49  ;;  %v333_v5 = vmul.f32 %v1524_v38, %v279_v49 }
  0xb5   : > { %v358_v0 = vadd.f32 %v326_v26, %v1564_v11  ;;  %v359_v43 = vadd.f32 %v327_v2, %v1566_v12  ;;  %v360_v27 = vadd.f32 %v328_v3, %v1568_v13  ;;  %v361_v44 = vadd.f32 %v329_v61, %v1570_v14 }
  0xb6   : > { %v1658_v45 = vadd.f32 %v330_v4, %v1555_v7  ;;  %v1661_v56 = vadd.f32 %v331_v62, %v1557_v1  ;;  %v1664_v35 = vadd.f32 %v332_v63, %v1559_v9  ;;  %v1667_v36 = vadd.f32 %v333_v5, %v1561_v10 }
  0xb7   : > { %v370_v37 = vpop.permute.xlu1 %369  ;;  %v374_v38 = vpop.permute.xlu0 %373 }
  0xb8   : > { %v421_v11 = vmul.f32 %v1527_v39, %v370_v37  ;;  %v422_v12 = vmul.f32 %v1530_v40, %v370_v37  ;;  %v423_v13 = vmul.f32 %v1533_v41, %v370_v37  ;;  %v424_v7 = vmul.f32 %v1536_v42, %v370_v37 }
  0xb9   : > { %v425_v14 = vmul.f32 %v1527_v39, %v374_v38  ;;  %v426_v1 = vmul.f32 %v1530_v40, %v374_v38  ;;  %v427_v9 = vmul.f32 %v1533_v41, %v374_v38  ;;  %v428_v46 = vmul.f32 %v1536_v42, %v374_v38 }
  0xba   : > { %v1678_v10 = vadd.f32 %v421_v11, %v1589_v32  ;;  %v1681_v51 = vadd.f32 %v422_v12, %v1591_v33  ;;  %v1684_v52 = vadd.f32 %v423_v13, %v1593_v34  ;;  %v1687_v53 = vadd.f32 %v424_v7, %v1595_v55 }
  0xbb   : > { %v1690_v48 = vadd.f32 %v425_v14, %v1580_v28  ;;  %v1693_v49 = vadd.f32 %v426_v1, %v1582_v29  ;;  %v1696_v26 = vadd.f32 %v427_v9, %v1584_v30  ;;  %v1699_v32 = vadd.f32 %v428_v46, %v1586_v31  ;;  %v378_v33 = vpop.permute.xlu1 %377  ;;  %v386_v2 = vpop.permute.xlu0 %385 }
  0xbc   : > { %v429_v34 = vmul.f32 %v1527_v39, %v378_v33  ;;  %v430_v3 = vmul.f32 %v1530_v40, %v378_v33  ;;  %v431_v55 = vmul.f32 %v1533_v41, %v378_v33  ;;  %v432_v28 = vmul.f32 %v1536_v42, %v378_v33 }
  0xbd   : > { %v437_v61 = vmul.f32 %v1527_v39, %v386_v2  ;;  %v438_v29 = vmul.f32 %v1530_v40, %v386_v2  ;;  %v439_v30 = vmul.f32 %v1533_v41, %v386_v2  ;;  %v440_v4 = vmul.f32 %v1536_v42, %v386_v2 }
  0xbe   : > { %v1710_v31 = vadd.f32 %v429_v34, %v1606_v50  ;;  %v1713_v62 = vadd.f32 %v430_v3, %v1609_v16  ;;  %v1716_v63 = vadd.f32 %v431_v55, %v1612_v17  ;;  %v1719_v5 = vadd.f32 %v432_v28, %v1615_v18 }
  0xbf   : > { %v1721_v37 = vadd.f32 %v437_v61, %v350_v54  ;;  %v1723_v38 = vadd.f32 %v438_v29, %v351_v15  ;;  %v1725_v11 = vadd.f32 %v439_v30, %v352_v57  ;;  %v1727_v12 = vadd.f32 %v440_v4, %v353_v58  ;;  %v382_v13 = vpop.permute.xlu1 %381  ;;  %v394_v50 = vpop.permute.xlu0 %393  ;;  %v1198_v29 = vld [vmem:[%s2457_s1 + $0x3] ss:$8 sm:$0xf] }
  0xc0   : > { %v433_v7 = vmul.f32 %v1527_v39, %v382_v13  ;;  %v434_v16 = vmul.f32 %v1530_v40, %v382_v13  ;;  %v435_v17 = vmul.f32 %v1533_v41, %v382_v13  ;;  %v436_v14 = vmul.f32 %v1536_v42, %v382_v13 }
  0xc1   : > { %v445_v18 = vmul.f32 %v1527_v39, %v394_v50  ;;  %v446_v54 = vmul.f32 %v1530_v40, %v394_v50  ;;  %v447_v15 = vmul.f32 %v1533_v41, %v394_v50  ;;  %v448_v57 = vmul.f32 %v1536_v42, %v394_v50 }
  0xc2   : > { %v1738_v58 = vadd.f32 %v433_v7, %v1617_v19  ;;  %v1741_v1 = vadd.f32 %v434_v16, %v1619_v24  ;;  %v1744_v9 = vadd.f32 %v435_v17, %v1621_v6  ;;  %v1747_v46 = vadd.f32 %v436_v14, %v1623_v25 }
  0xc3   : > { %v1749_v33 = vadd.f32 %v445_v18, %v358_v0  ;;  %v1751_v2 = vadd.f32 %v446_v54, %v359_v43  ;;  %v1753_v34 = vadd.f32 %v447_v15, %v360_v27  ;;  %v1755_v3 = vadd.f32 %v448_v57, %v361_v44  ;;  %v390_v55 = vpop.permute.xlu1 %389 }
  0xc4   : > { %v441_v19 = vmul.f32 %v1527_v39, %v390_v55  ;;  %v442_v24 = vmul.f32 %v1530_v40, %v390_v55  ;;  %v443_v28 = vmul.f32 %v1533_v41, %v390_v55  ;;  %v444_v6 = vmul.f32 %v1536_v42, %v390_v55  ;;  %v1761_v61 = vpop.permute.xlu0 %488 }
  0xc6   : > { %v1764_v25 = vadd.f32 %v441_v19, %v1634_v59  ;;  %v1767_v0 = vadd.f32 %v442_v24, %v1637_v60  ;;  %v1770_v43 = vadd.f32 %v443_v28, %v1640_v8  ;;  %v1773_v27 = vadd.f32 %v444_v6, %v1643_v47 }
  0xc7   : > { %v398_v44 = vpop.permute.xlu1 %397 }
  0xc8   : > { %v449_v30 = vmul.f32 %v1527_v39, %v398_v44  ;;  %v450_v4 = vmul.f32 %v1530_v40, %v398_v44  ;;  %v451_v59 = vmul.f32 %v1533_v41, %v398_v44  ;;  %v452_v60 = vmul.f32 %v1536_v42, %v398_v44  ;;  %v1782_v13 = vpop.permute.xlu0 %500 }
  0xc9   : > { %v1797_v39 = vrot.slane %v1198_v29, %v1491_v20  ;;  %v1800_v40 = vrot.slane %v1198_v29, %v1493_v21  ;;  %v1803_v41 = vrot.slane %v1198_v29, %v1495_v22  ;;  %v1806_v42 = vrot.slane %v1198_v29, %v1497_v23 }
  0xca   : > { %v1785_v8 = vadd.f32 %v449_v30, %v1658_v45  ;;  %v1788_v47 = vadd.f32 %v450_v4, %v1661_v56  ;;  %v1791_v50 = vadd.f32 %v451_v59, %v1664_v35  ;;  %v1794_v7 = vadd.f32 %v452_v60, %v1667_v36 }
  0xcc   : > { %v493_v45 = vpop.permute.xlu1 %492  ;;  %v1808_v56 = vpop.permute.xlu0 %508 }
  0xcd   : > { %v544_v35 = vmul.f32 %v1797_v39, %v493_v45  ;;  %v545_v36 = vmul.f32 %v1800_v40, %v493_v45  ;;  %v546_v16 = vmul.f32 %v1803_v41, %v493_v45  ;;  %v547_v17 = vmul.f32 %v1806_v42, %v493_v45 }
  0xcf   : > { %v1815_v14 = vadd.f32 %v544_v35, %v1690_v48  ;;  %v1818_v18 = vadd.f32 %v545_v36, %v1693_v49  ;;  %v1821_v54 = vadd.f32 %v546_v16, %v1696_v26  ;;  %v1824_v15 = vadd.f32 %v547_v17, %v1699_v32  ;;  %v1200_v35 = vld [vmem:[%s2457_s1 + $0x5] ss:$8 sm:$0xf] }
  0xd0   : > { %v497_v57 = vpop.permute.xlu1 %496  ;;  %v1826_v55 = vpop.permute.xlu0 %516 }
  0xd1   : > { %v548_v19 = vmul.f32 %v1797_v39, %v497_v57  ;;  %v549_v24 = vmul.f32 %v1800_v40, %v497_v57  ;;  %v550_v28 = vmul.f32 %v1803_v41, %v497_v57  ;;  %v551_v48 = vmul.f32 %v1806_v42, %v497_v57 }
  0xd3   : > { %v1833_v49 = vadd.f32 %v548_v19, %v1710_v31  ;;  %v1836_v26 = vadd.f32 %v549_v24, %v1713_v62  ;;  %v1839_v32 = vadd.f32 %v550_v28, %v1716_v63  ;;  %v1842_v6 = vadd.f32 %v551_v48, %v1719_v5  ;;  %v1199_v31 = vld [vmem:[%s2457_s1 + $0x4] ss:$8 sm:$0xf]  ;;  %v1201_v28 = vld [vmem:[%s2457_s1 + $0x6] ss:$8 sm:$0xf] }
  0xd4   : > { %v505_v44 = vpop.permute.xlu1 %504  ;;  %v1869_v36 = vrot.slane %v1199_v31, %v1491_v20  ;;  %v1872_v16 = vrot.slane %v1199_v31, %v1493_v21  ;;  %v1890_v48 = vrot.slane %v1200_v35, %v1491_v20 }
  0xd5   : > { %2472 = vst [vmem:[#allocation5_spill] sm:$0xff] %v1833_v49  ;;  %2473 = vst [vmem:[#allocation6_spill] sm:$0xff] %v1836_v26  ;;  %v556_v29 = vmul.f32 %v1797_v39, %v505_v44  ;;  %v557_v30 = vmul.f32 %v1800_v40, %v505_v44  ;;  %v558_v4 = vmul.f32 %v1803_v41, %v505_v44  ;;  %v1851_v62 = vpop.permute.xlu0 %611 }
  0xd6   : > { %2474 = vst [vmem:[#allocation7_spill] sm:$0xff] %v1839_v32  ;;  %2475 = vst [vmem:[#allocation8_spill] sm:$0xff] %v1842_v6  ;;  %v559_v59 = vmul.f32 %v1806_v42, %v505_v44  ;;  %v1893_v44 = vrot.slane %v1200_v35, %v1493_v21  ;;  %v1917_v32 = vrot.slane %v1201_v28, %v1491_v20 }
  0xd7   : > { %v1854_v63 = vadd.f32 %v556_v29, %v1721_v37  ;;  %v1857_v5 = vadd.f32 %v557_v30, %v1723_v38  ;;  %v1860_v60 = vadd.f32 %v558_v4, %v1725_v11  ;;  %v1875_v37 = vrot.slane %v1199_v31, %v1495_v22  ;;  %v1202_v4 = vld [vmem:[%s2457_s1 + $0x7] ss:$8 sm:$0xf] }
  0xd8   : > { %v1863_v45 = vadd.f32 %v559_v59, %v1727_v12  ;;  %v1878_v38 = vrot.slane %v1199_v31, %v1497_v23  ;;  %v513_v11 = vpop.permute.xlu1 %512  ;;  %2476 = vst [vmem:[#allocation9_spill] sm:$0xff] %v1893_v44  ;;  %v1896_v29 = vrot.slane %v1200_v35, %v1495_v22  ;;  %v1899_v30 = vrot.slane %v1200_v35, %v1497_v23 }
  0xd9   : > { %v564_v12 = vmul.f32 %v1797_v39, %v513_v11  ;;  %v565_v17 = vmul.f32 %v1800_v40, %v513_v11  ;;  %v566_v57 = vmul.f32 %v1803_v41, %v513_v11  ;;  %v567_v19 = vmul.f32 %v1806_v42, %v513_v11  ;;  %v1884_v24 = vpop.permute.xlu0 %623  ;;  %2479 = vst [vmem:[#allocation12_spill] sm:$0xff] %v1917_v32 }
  0xda   : > { %2477 = vst [vmem:[#allocation10_spill] sm:$0xff] %v1896_v29  ;;  %2478 = vst [vmem:[#allocation11_spill] sm:$0xff] %v1899_v30  ;;  %v1920_v35 = vrot.slane %v1201_v28, %v1493_v21  ;;  %v1923_v26 = vrot.slane %v1201_v28, %v1495_v22 }
  0xdb   : > { %v1905_v59 = vadd.f32 %v564_v12, %v1749_v33  ;;  %v1908_v31 = vadd.f32 %v565_v17, %v1751_v2  ;;  %v1911_v11 = vadd.f32 %v566_v57, %v1753_v34  ;;  %v1914_v6 = vadd.f32 %v567_v19, %v1755_v3 }
  0xdc   : > { %2480 = vst [vmem:[#allocation13_spill] sm:$0xff] %v1920_v35  ;;  %2481 = vst [vmem:[#allocation14_spill] sm:$0xff] %v1923_v26  ;;  %v1926_v33 = vrot.slane %v1201_v28, %v1497_v23  ;;  %v1929_v34 = vrot.slane %v1202_v4, %v1491_v20  ;;  %v1932_v3 = vrot.slane %v1202_v4, %v1493_v21 }
  0xdd   : > { %v608_v2 = vpop.permute.xlu1 %607  ;;  %v632_v12 = vpop.permute.xlu0 %631  ;;  %v1935_v17 = vrot.slane %v1202_v4, %v1495_v22  ;;  %v1938_v57 = vrot.slane %v1202_v4, %v1497_v23  ;;  %v540_v19 = vmul.f32 %v1797_v39, %v1761_v61  ;;  %v541_v28 = vmul.f32 %v1800_v40, %v1761_v61 }
  0xde   : > { %2482 = vst [vmem:[#allocation15_spill] sm:$0xff] %v1926_v33  ;;  %2483 = vst [vmem:[#allocation16_spill] sm:$0xff] %v1929_v34  ;;  %v542_v33 = vmul.f32 %v1803_v41, %v1761_v61  ;;  %v543_v20 = vmul.f32 %v1806_v42, %v1761_v61  ;;  %v552_v21 = vmul.f32 %v1797_v39, %v1782_v13 }
  0xdf   : > { %2484 = vst [vmem:[#allocation17_spill] sm:$0xff] %v1932_v3  ;;  %2485 = vst [vmem:[#allocation18_spill] sm:$0xff] %v1935_v17  ;;  %v553_v22 = vmul.f32 %v1800_v40, %v1782_v13  ;;  %v554_v23 = vmul.f32 %v1803_v41, %v1782_v13  ;;  %v555_v4 = vmul.f32 %v1806_v42, %v1782_v13 }
  0xe0   : > { %2486 = vst [vmem:[#allocation19_spill] sm:$0xff] %v1938_v57  ;;  %v560_v57 = vmul.f32 %v1797_v39, %v1808_v56  ;;  %v561_v17 = vmul.f32 %v1800_v40, %v1808_v56  ;;  %v562_v61 = vmul.f32 %v1803_v41, %v1808_v56  ;;  %v563_v3 = vmul.f32 %v1806_v42, %v1808_v56 }
  0xe1   : > { %v568_v34 = vmul.f32 %v1797_v39, %v1826_v55  ;;  %v569_v26 = vmul.f32 %v1800_v40, %v1826_v55  ;;  %v570_v13 = vmul.f32 %v1803_v41, %v1826_v55  ;;  %v571_v35 = vmul.f32 %v1806_v42, %v1826_v55  ;;  %v1972_v32 = vpop.permute.xlu1 %615 }
  0xe2   : > { %v572_v49 = vadd.f32 %v540_v19, %v1678_v10  ;;  %v573_v30 = vadd.f32 %v541_v28, %v1681_v51  ;;  %v574_v56 = vadd.f32 %v542_v33, %v1684_v52  ;;  %v575_v29 = vadd.f32 %v543_v20, %v1687_v53  ;;  %v727_v39 = vpop.permute.xlu0 %726 }
  0xe3   : > { %v1979_v44 = vadd.f32 %v552_v21, %v1738_v58  ;;  %v1982_v40 = vadd.f32 %v553_v22, %v1741_v1  ;;  %v1985_v41 = vadd.f32 %v554_v23, %v1744_v9  ;;  %v1988_v42 = vadd.f32 %v555_v4, %v1747_v46 }
  0xe4   : > { %v1991_v10 = vadd.f32 %v560_v57, %v1764_v25  ;;  %v1994_v51 = vadd.f32 %v561_v17, %v1767_v0  ;;  %v1997_v52 = vadd.f32 %v562_v61, %v1770_v43  ;;  %v2000_v53 = vadd.f32 %v563_v3, %v1773_v27 }
  0xe5   : > { %v2003_v58 = vadd.f32 %v568_v34, %v1785_v8  ;;  %v2006_v1 = vadd.f32 %v569_v26, %v1788_v47  ;;  %v2009_v9 = vadd.f32 %v570_v13, %v1791_v50  ;;  %v2012_v46 = vadd.f32 %v571_v35, %v1794_v7  ;;  %v620_v25 = vpop.permute.xlu1 %619 }
  0xe6   : > { %v663_v0 = vmul.f32 %v1869_v36, %v1851_v62  ;;  %v664_v43 = vmul.f32 %v1872_v16, %v1851_v62  ;;  %v665_v27 = vmul.f32 %v1875_v37, %v1851_v62  ;;  %v666_v8 = vmul.f32 %v1878_v38, %v1851_v62  ;;  %v739_v47 = vpop.permute.xlu0 %738 }
  0xe7   : > { %v675_v50 = vmul.f32 %v1869_v36, %v1884_v24  ;;  %v676_v7 = vmul.f32 %v1872_v16, %v1884_v24  ;;  %v677_v55 = vmul.f32 %v1875_v37, %v1884_v24  ;;  %v678_v26 = vmul.f32 %v1878_v38, %v1884_v24 }
  0xe8   : > { %v659_v35 = vmul.f32 %v1869_v36, %v608_v2  ;;  %v660_v33 = vmul.f32 %v1872_v16, %v608_v2  ;;  %v661_v34 = vmul.f32 %v1875_v37, %v608_v2  ;;  %v662_v62 = vmul.f32 %v1878_v38, %v608_v2 }
  0xe9   : > { %v683_v3 = vmul.f32 %v1869_v36, %v632_v12  ;;  %v684_v17 = vmul.f32 %v1872_v16, %v632_v12  ;;  %v685_v57 = vmul.f32 %v1875_v37, %v632_v12  ;;  %v686_v19 = vmul.f32 %v1878_v38, %v632_v12  ;;  %v628_v28 = vpop.permute.xlu1 %627 }
  0xea   : > { %v2039_v20 = vadd.f32 %v663_v0, %v1815_v14  ;;  %v2042_v24 = vadd.f32 %v664_v43, %v1818_v18  ;;  %v2045_v21 = vadd.f32 %v665_v27, %v1821_v54  ;;  %v2048_v2 = vadd.f32 %v666_v8, %v1824_v15  ;;  %v747_v22 = vpop.permute.xlu0 %746  ;;  %v2492_v27 = vld [vmem:[#allocation9_spill] sm:$0xff] }
  0xeb   : > { %v2051_v23 = vadd.f32 %v675_v50, %v1854_v63  ;;  %v2054_v4 = vadd.f32 %v676_v7, %v1857_v5  ;;  %v2057_v12 = vadd.f32 %v677_v55, %v1860_v60  ;;  %v2060_v14 = vadd.f32 %v678_v26, %v1863_v45  ;;  %v2493_v50 = vld [vmem:[#allocation10_spill] sm:$0xff] }
  0xec   : > { %v691_v18 = vadd.f32 %v659_v35, %v572_v49  ;;  %v692_v61 = vadd.f32 %v660_v33, %v573_v30  ;;  %v693_v54 = vadd.f32 %v661_v34, %v574_v56  ;;  %v694_v13 = vadd.f32 %v662_v62, %v575_v29 }
  0xed   : > { %2487 = vst [vmem:[#allocation20_spill] sm:$0xff] %v2060_v14  ;;  %v2063_v15 = vadd.f32 %v683_v3, %v1905_v59  ;;  %v2066_v0 = vadd.f32 %v684_v17, %v1908_v31  ;;  %v2069_v63 = vadd.f32 %v685_v57, %v1911_v11  ;;  %v2072_v5 = vadd.f32 %v686_v19, %v1914_v6  ;;  %v636_v60 = vpop.permute.xlu1 %635  ;;  %v2495_v19 = vld [vmem:[#allocation5_spill] sm:$0xff]  ;;  %v2498_v14 = vld [vmem:[#allocation8_spill] sm:$0xff] }
  0xee   : > { %v671_v45 = vmul.f32 %v1869_v36, %v620_v25  ;;  %v672_v49 = vmul.f32 %v1872_v16, %v620_v25  ;;  %v673_v30 = vmul.f32 %v1875_v37, %v620_v25  ;;  %v674_v29 = vmul.f32 %v1878_v38, %v620_v25  ;;  %v755_v59 = vpop.permute.xlu0 %754  ;;  %v2494_v25 = vld [vmem:[#allocation11_spill] sm:$0xff] }
  0xef   : > { %2488 = vst [vmem:[#allocation21_spill] sm:$0xff] %v2063_v15  ;;  %2489 = vst [vmem:[#allocation22_spill] sm:$0xff] %v2066_v0  ;;  %v667_v31 = vmul.f32 %v1869_v36, %v1972_v32  ;;  %v668_v11 = vmul.f32 %v1872_v16, %v1972_v32  ;;  %v669_v6 = vmul.f32 %v1875_v37, %v1972_v32  ;;  %v2497_v0 = vld [vmem:[#allocation7_spill] sm:$0xff] }
  0xf0   : > { %2490 = vst [vmem:[#allocation23_spill] sm:$0xff] %v2069_v63  ;;  %2491 = vst [vmem:[#allocation24_spill] sm:$0xff] %v2072_v5  ;;  %v670_v56 = vmul.f32 %v1878_v38, %v1972_v32  ;;  %v778_v43 = vmul.f32 %v1890_v48, %v727_v39  ;;  %v779_v8 = vmul.f32 %v2492_v27, %v727_v39 }
  0xf1   : > { %v780_v7 = vmul.f32 %v2493_v50, %v727_v39  ;;  %v781_v55 = vmul.f32 %v2494_v25, %v727_v39  ;;  %v790_v26 = vmul.f32 %v1890_v48, %v739_v47  ;;  %v791_v35 = vmul.f32 %v2492_v27, %v739_v47  ;;  %v2496_v39 = vld [vmem:[#allocation6_spill] sm:$0xff] }
  0xf2   : > { %v792_v33 = vmul.f32 %v2493_v50, %v739_v47  ;;  %v793_v34 = vmul.f32 %v2494_v25, %v739_v47  ;;  %v703_v62 = vadd.f32 %v671_v45, %v1979_v44  ;;  %v704_v32 = vadd.f32 %v672_v49, %v1982_v40  ;;  %v731_v57 = vpop.permute.xlu1 %730 }
  0xf3   : > { %v705_v3 = vadd.f32 %v673_v30, %v1985_v41  ;;  %v706_v17 = vadd.f32 %v674_v29, %v1988_v42  ;;  %v2099_v5 = vadd.f32 %v667_v31, %v2495_v19  ;;  %v2102_v63 = vadd.f32 %v668_v11, %v2496_v39  ;;  %v850_v44 = vpop.permute.xlu0 %849  ;;  %v2501_v39 = vld [vmem:[#allocation13_spill] sm:$0xff] }
  0xf4   : > { %v2105_v15 = vadd.f32 %v669_v6, %v2497_v0  ;;  %v2108_v47 = vadd.f32 %v670_v56, %v2498_v14  ;;  %v2110_v45 = vadd.f32 %v778_v43, %v691_v18  ;;  %v2112_v40 = vadd.f32 %v779_v8, %v692_v61 }
  0xf5   : > { %v2114_v41 = vadd.f32 %v780_v7, %v693_v54  ;;  %v2116_v42 = vadd.f32 %v781_v55, %v694_v13  ;;  %v679_v49 = vmul.f32 %v1869_v36, %v628_v28  ;;  %v680_v30 = vmul.f32 %v1872_v16, %v628_v28 }
  0xf6   : > { %v681_v29 = vmul.f32 %v1875_v37, %v628_v28  ;;  %v682_v0 = vmul.f32 %v1878_v38, %v628_v28  ;;  %v2122_v31 = vadd.f32 %v790_v26, %v703_v62  ;;  %v2124_v14 = vadd.f32 %v791_v35, %v704_v32  ;;  %v735_v54 = vpop.permute.xlu1 %734 }
  0xf7   : > { %v2126_v18 = vadd.f32 %v792_v33, %v705_v3  ;;  %v2128_v61 = vadd.f32 %v793_v34, %v706_v17  ;;  %v687_v13 = vmul.f32 %v1869_v36, %v636_v60  ;;  %v688_v11 = vmul.f32 %v1872_v16, %v636_v60  ;;  %v2134_v43 = vpop.permute.xlu0 %861 }
  0xf8   : > { %v689_v6 = vmul.f32 %v1875_v37, %v636_v60  ;;  %v690_v56 = vmul.f32 %v1878_v38, %v636_v60  ;;  %v798_v28 = vmul.f32 %v1890_v48, %v747_v22  ;;  %v799_v8 = vmul.f32 %v2492_v27, %v747_v22 }
  0xf9   : > { %2499 = vst [vmem:[#allocation9_spill] sm:$0xff] %v2128_v61  ;;  %v800_v7 = vmul.f32 %v2493_v50, %v747_v22  ;;  %v801_v55 = vmul.f32 %v2494_v25, %v747_v22  ;;  %v711_v26 = vadd.f32 %v679_v49, %v1991_v10  ;;  %v712_v36 = vadd.f32 %v680_v30, %v1994_v51  ;;  %v2502_v49 = vld [vmem:[#allocation14_spill] sm:$0xff]  ;;  %v2503_v30 = vld [vmem:[#allocation15_spill] sm:$0xff] }
  0xfa   : > { %v713_v16 = vadd.f32 %v681_v29, %v1997_v52  ;;  %v714_v37 = vadd.f32 %v682_v0, %v2000_v53  ;;  %v782_v38 = vmul.f32 %v1890_v48, %v731_v57  ;;  %v783_v60 = vmul.f32 %v2492_v27, %v731_v57  ;;  %v2148_v34 = vpop.permute.xlu1 %742 }
  0xfb   : > { %v784_v35 = vmul.f32 %v2493_v50, %v731_v57  ;;  %v785_v33 = vmul.f32 %v2494_v25, %v731_v57  ;;  %v719_v22 = vadd.f32 %v687_v13, %v2003_v58  ;;  %v720_v10 = vadd.f32 %v688_v11, %v2006_v1  ;;  %v2154_v62 = vpop.permute.xlu0 %869  ;;  %v2500_v57 = vld [vmem:[#allocation12_spill] sm:$0xff] }
  0xfc   : > { %v721_v51 = vadd.f32 %v689_v6, %v2009_v9  ;;  %v722_v52 = vadd.f32 %v690_v56, %v2012_v46  ;;  %v806_v53 = vmul.f32 %v1890_v48, %v755_v59  ;;  %v807_v32 = vmul.f32 %v2492_v27, %v755_v59 }
  0xfd   : > { %v808_v3 = vmul.f32 %v2493_v50, %v755_v59  ;;  %v809_v17 = vmul.f32 %v2494_v25, %v755_v59  ;;  %v901_v19 = vmul.f32 %v2500_v57, %v850_v44  ;;  %v902_v58 = vmul.f32 %v2501_v39, %v850_v44 }
  0xfe   : > { %v903_v1 = vmul.f32 %v2502_v49, %v850_v44  ;;  %v904_v9 = vmul.f32 %v2503_v30, %v850_v44  ;;  %v814_v46 = vadd.f32 %v782_v38, %v2039_v20  ;;  %v815_v29 = vadd.f32 %v783_v60, %v2042_v24  ;;  %v2168_v11 = vpop.permute.xlu1 %750  ;;  %v2504_v60 = vld [vmem:[#allocation16_spill] sm:$0xff] }
  0xff   : > { %v816_v0 = vadd.f32 %v784_v35, %v2045_v21  ;;  %v817_v13 = vadd.f32 %v785_v33, %v2048_v2  ;;  %v2170_v59 = vadd.f32 %v798_v28, %v711_v26  ;;  %v2172_v6 = vadd.f32 %v799_v8, %v712_v36  ;;  %v2505_v33 = vld [vmem:[#allocation17_spill] sm:$0xff] }
 0x100   : > { %v2174_v56 = vadd.f32 %v800_v7, %v713_v16  ;;  %v2176_v61 = vadd.f32 %v801_v55, %v714_v37  ;;  %v2178_v44 = vadd.f32 %v806_v53, %v719_v22  ;;  %v2180_v20 = vadd.f32 %v807_v32, %v720_v10  ;;  %v965_v38 = vpop.permute.xlu0 %964  ;;  %v2506_v10 = vld [vmem:[#allocation18_spill] sm:$0xff] }
 0x101   : > { %v2182_v24 = vadd.f32 %v808_v3, %v721_v51  ;;  %v2184_v21 = vadd.f32 %v809_v17, %v722_v52  ;;  %v786_v2 = vmul.f32 %v1890_v48, %v735_v54  ;;  %v787_v28 = vmul.f32 %v2492_v27, %v735_v54  ;;  %v2507_v52 = vld [vmem:[#allocation19_spill] sm:$0xff] }
 0x102   : > { %v788_v8 = vmul.f32 %v2493_v50, %v735_v54  ;;  %v789_v7 = vmul.f32 %v2494_v25, %v735_v54  ;;  %v2191_v55 = vadd.f32 %v901_v19, %v814_v46  ;;  %v2193_v26 = vadd.f32 %v902_v58, %v815_v29 }
 0x103   : > { %v2195_v36 = vadd.f32 %v903_v1, %v816_v0  ;;  %v2197_v16 = vadd.f32 %v904_v9, %v817_v13  ;;  %v846_v37 = vpop.permute.xlu1 %845  ;;  %v1016_v35 = vmul.f32 %v2504_v60, %v965_v38  ;;  %v1017_v22 = vmul.f32 %v2505_v33, %v965_v38 }
 0x104   : > { %v1018_v51 = vmul.f32 %v2506_v10, %v965_v38  ;;  %v1019_v53 = vmul.f32 %v2507_v52, %v965_v38  ;;  %v897_v54 = vmul.f32 %v2500_v57, %v846_v37  ;;  %v898_v32 = vmul.f32 %v2501_v39, %v846_v37  ;;  %v977_v19 = vpop.permute.xlu0 %976 }
 0x105   : > { %v899_v3 = vmul.f32 %v2502_v49, %v846_v37  ;;  %v900_v17 = vmul.f32 %v2503_v30, %v846_v37  ;;  %v2210_v58 = vadd.f32 %v786_v2, %v2099_v5  ;;  %v2213_v1 = vadd.f32 %v787_v28, %v2102_v63 }
 0x106   : > { %v2216_v9 = vadd.f32 %v788_v8, %v2105_v15  ;;  %v2219_v46 = vadd.f32 %v789_v7, %v2108_v47  ;;  %v929_v29 = vadd.f32 %v897_v54, %v2110_v45  ;;  %v930_v0 = vadd.f32 %v898_v32, %v2112_v40 }
 0x107   : > { %v931_v13 = vadd.f32 %v899_v3, %v2114_v41  ;;  %v932_v38 = vadd.f32 %v900_v17, %v2116_v42  ;;  %v2227_v5 = vmul.f32 %v2500_v57, %v2134_v43  ;;  %v2231_v63 = vmul.f32 %v2501_v39, %v2134_v43  ;;  %v2241_v45 = vpop.permute.xlu1 %853 }
 0x108   : > { %v2235_v15 = vmul.f32 %v2502_v49, %v2134_v43  ;;  %v2239_v47 = vmul.f32 %v2503_v30, %v2134_v43  ;;  %v1048_v40 = vadd.f32 %v1016_v35, %v929_v29  ;;  %v1049_v41 = vadd.f32 %v1017_v22, %v930_v0  ;;  %v985_v43 = vpop.permute.xlu0 %984 }
 0x109   : > { %v1050_v42 = vadd.f32 %v1018_v51, %v931_v13  ;;  %v1051_v2 = vadd.f32 %v1019_v53, %v932_v38  ;;  %v794_v28 = vmul.f32 %v1890_v48, %v2148_v34  ;;  %v795_v8 = vmul.f32 %v2492_v27, %v2148_v34 }
 0x10a   : > { %v796_v7 = vmul.f32 %v2493_v50, %v2148_v34  ;;  %v797_v37 = vmul.f32 %v2494_v25, %v2148_v34  ;;  %v2253_v54 = vmul.f32 %v2500_v57, %v2154_v62  ;;  %v2257_v35 = vmul.f32 %v2501_v39, %v2154_v62  ;;  %1080 = vst [vmem:[%s2267_s25] sm:$0xff] %v1048_v40 }
 0x10b   : > { %v2261_v22 = vmul.f32 %v2502_v49, %v2154_v62  ;;  %v2265_v51 = vmul.f32 %v2503_v30, %v2154_v62  ;;  %1081 = vst [vmem:[%s2267_s25 + $0x8] sm:$0xff] %v1049_v41  ;;  %1082 = vst [vmem:[%s2267_s25 + $0x10] sm:$0xff] %v1050_v42  ;;  %v858_v34 = vpop.permute.xlu1 %857  ;;  %v1028_v53 = vmul.f32 %v2504_v60, %v977_v19  ;;  %v2511_v42 = vld [vmem:[#allocation20_spill] sm:$0xff] }
 0x10c   : > { %2508 = vst [vmem:[#allocation10_spill] sm:$0xff] %v2257_v35  ;;  %1083 = vst [vmem:[%s2267_s25 + $0x18] sm:$0xff] %v1051_v2  ;;  %v1029_v32 = vmul.f32 %v2505_v33, %v977_v19  ;;  %v1030_v3 = vmul.f32 %v2506_v10, %v977_v19  ;;  %v1031_v62 = vmul.f32 %v2507_v52, %v977_v19  ;;  %v2512_v35 = vld [vmem:[#allocation9_spill] sm:$0xff] }
 0x10d   : > { %2509 = vst [vmem:[#allocation11_spill] sm:$0xff] %v2261_v22  ;;  %2510 = vst [vmem:[#allocation5_spill] sm:$0xff] %v2265_v51  ;;  %v909_v17 = vmul.f32 %v2500_v57, %v858_v34  ;;  %v910_v29 = vmul.f32 %v2501_v39, %v858_v34  ;;  %v911_v0 = vmul.f32 %v2502_v49, %v858_v34 }
 0x10e   : > { %v912_v13 = vmul.f32 %v2503_v30, %v858_v34  ;;  %v2282_v38 = vadd.f32 %v794_v28, %v2051_v23  ;;  %v2285_v40 = vadd.f32 %v795_v8, %v2054_v4  ;;  %v2288_v41 = vadd.f32 %v796_v7, %v2057_v12 }
 0x10f   : > { %v2291_v2 = vadd.f32 %v797_v37, %v2511_v42  ;;  %v941_v19 = vadd.f32 %v909_v17, %v2122_v31  ;;  %v942_v51 = vadd.f32 %v910_v29, %v2124_v14  ;;  %v943_v22 = vadd.f32 %v911_v0, %v2126_v18  ;;  %v866_v23 = vpop.permute.xlu1 %865  ;;  %v993_v31 = vpop.permute.xlu0 %992 }
 0x110   : > { %v944_v34 = vadd.f32 %v912_v13, %v2512_v35  ;;  %v1036_v4 = vmul.f32 %v2504_v60, %v985_v43  ;;  %v1037_v12 = vmul.f32 %v2505_v33, %v985_v43  ;;  %v1038_v28 = vmul.f32 %v2506_v10, %v985_v43 }
 0x111   : > { %v1039_v8 = vmul.f32 %v2507_v52, %v985_v43  ;;  %v1060_v7 = vadd.f32 %v1028_v53, %v941_v19  ;;  %v1061_v14 = vadd.f32 %v1029_v32, %v942_v51  ;;  %v1062_v37 = vadd.f32 %v1030_v3, %v943_v22 }
 0x112   : > { %v1063_v18 = vadd.f32 %v1031_v62, %v944_v34  ;;  %v917_v17 = vmul.f32 %v2500_v57, %v866_v23  ;;  %v918_v35 = vmul.f32 %v2501_v39, %v866_v23  ;;  %v919_v29 = vmul.f32 %v2502_v49, %v866_v23 }
 0x113   : > { %v920_v0 = vmul.f32 %v2503_v30, %v866_v23  ;;  %1092 = vst [vmem:[%s2267_s25 + $0x60] sm:$0xff] %v1060_v7  ;;  %1093 = vst [vmem:[%s2267_s25 + $0x68] sm:$0xff] %v1061_v14  ;;  %v1044_v13 = vmul.f32 %v2504_v60, %v993_v31  ;;  %v1045_v43 = vmul.f32 %v2505_v33, %v993_v31  ;;  %v874_v42 = vpop.permute.xlu1 %873 }
 0x114   : > { %1094 = vst [vmem:[%s2267_s25 + $0x70] sm:$0xff] %v1062_v37  ;;  %1095 = vst [vmem:[%s2267_s25 + $0x78] sm:$0xff] %v1063_v18  ;;  %v1046_v51 = vmul.f32 %v2506_v10, %v993_v31  ;;  %v1047_v22 = vmul.f32 %v2507_v52, %v993_v31  ;;  %v949_v53 = vadd.f32 %v917_v17, %v2170_v59 }
 0x115   : > { %v950_v32 = vadd.f32 %v918_v35, %v2172_v6  ;;  %v951_v3 = vadd.f32 %v919_v29, %v2174_v56  ;;  %v952_v62 = vadd.f32 %v920_v0, %v2176_v61  ;;  %v925_v19 = vmul.f32 %v2500_v57, %v874_v42 }
 0x116   : > { %v926_v34 = vmul.f32 %v2501_v39, %v874_v42  ;;  %v927_v23 = vmul.f32 %v2502_v49, %v874_v42  ;;  %v928_v31 = vmul.f32 %v2503_v30, %v874_v42  ;;  %v1068_v59 = vadd.f32 %v1036_v4, %v949_v53  ;;  %v2513_v42 = vld [vmem:[#allocation21_spill] sm:$0xff] }
 0x117   : > { %v1069_v7 = vadd.f32 %v1037_v12, %v950_v32  ;;  %v1070_v6 = vadd.f32 %v1038_v28, %v951_v3  ;;  %v1071_v14 = vadd.f32 %v1039_v8, %v952_v62  ;;  %v957_v56 = vadd.f32 %v925_v19, %v2178_v44 }
 0x118   : > { %v958_v61 = vadd.f32 %v926_v34, %v2180_v20  ;;  %v959_v37 = vadd.f32 %v927_v23, %v2182_v24  ;;  %v960_v18 = vadd.f32 %v928_v31, %v2184_v21  ;;  %v905_v17 = vmul.f32 %v2500_v57, %v2241_v45  ;;  %1100 = vst [vmem:[%s2267_s25 + $0xa0] sm:$0xff] %v1068_v59  ;;  %v969_v21 = vpop.permute.xlu1 %968  ;;  %v2514_v34 = vld [vmem:[#allocation22_spill] sm:$0xff]  ;;  %v2515_v31 = vld [vmem:[#allocation23_spill] sm:$0xff] }
 0x119   : > { %v906_v35 = vmul.f32 %v2501_v39, %v2241_v45  ;;  %v907_v4 = vmul.f32 %v2502_v49, %v2241_v45  ;;  %v908_v12 = vmul.f32 %v2503_v30, %v2241_v45  ;;  %1101 = vst [vmem:[%s2267_s25 + $0xa8] sm:$0xff] %v1069_v7  ;;  %1102 = vst [vmem:[%s2267_s25 + $0xb0] sm:$0xff] %v1070_v6 }
 0x11a   : > { %1103 = vst [vmem:[%s2267_s25 + $0xb8] sm:$0xff] %v1071_v14  ;;  %v1076_v44 = vadd.f32 %v1044_v13, %v957_v56  ;;  %v1077_v20 = vadd.f32 %v1045_v43, %v958_v61  ;;  %v1078_v57 = vadd.f32 %v1046_v51, %v959_v37  ;;  %v1079_v24 = vadd.f32 %v1047_v22, %v960_v18  ;;  %v2517_v37 = vld [vmem:[#allocation10_spill] sm:$0xff] }
 0x11b   : > { %v1020_v39 = vmul.f32 %v2504_v60, %v969_v21  ;;  %v1021_v49 = vmul.f32 %v2505_v33, %v969_v21  ;;  %v1022_v28 = vmul.f32 %v2506_v10, %v969_v21  ;;  %v1023_v30 = vmul.f32 %v2507_v52, %v969_v21 }
 0x11c   : > { %v802_v45 = vmul.f32 %v1890_v48, %v2168_v11  ;;  %v803_v8 = vmul.f32 %v2492_v27, %v2168_v11  ;;  %v804_v29 = vmul.f32 %v2493_v50, %v2168_v11  ;;  %v805_v0 = vmul.f32 %v2494_v25, %v2168_v11  ;;  %1108 = vst [vmem:[%s2267_s25 + $0xe0] sm:$0xff] %v1076_v44  ;;  %v973_v22 = vpop.permute.xlu1 %972 }
 0x11d   : > { %1109 = vst [vmem:[%s2267_s25 + $0xe8] sm:$0xff] %v1077_v20  ;;  %1110 = vst [vmem:[%s2267_s25 + $0xf0] sm:$0xff] %v1078_v57  ;;  %v1052_v13 = vadd.f32 %v1020_v39, %v2191_v55  ;;  %v1053_v48 = vadd.f32 %v1021_v49, %v2193_v26  ;;  %v1054_v27 = vadd.f32 %v1022_v28, %v2195_v36 }
 0x11e   : > { %1111 = vst [vmem:[%s2267_s25 + $0xf8] sm:$0xff] %v1079_v24  ;;  %v1055_v43 = vadd.f32 %v1023_v30, %v2197_v16  ;;  %v937_v50 = vadd.f32 %v905_v17, %v2210_v58  ;;  %v938_v51 = vadd.f32 %v906_v35, %v2213_v1  ;;  %v939_v25 = vadd.f32 %v907_v4, %v2216_v9  ;;  %v2518_v17 = vld [vmem:[#allocation11_spill] sm:$0xff]  ;;  %v2519_v4 = vld [vmem:[#allocation5_spill] sm:$0xff] }
 0x11f   : > { %v940_v11 = vadd.f32 %v908_v12, %v2219_v46  ;;  %1084 = vst [vmem:[%s2267_s25 + $0x20] sm:$0xff] %v1052_v13  ;;  %1085 = vst [vmem:[%s2267_s25 + $0x28] sm:$0xff] %v1053_v48  ;;  %v1024_v55 = vmul.f32 %v2504_v60, %v973_v22  ;;  %v1025_v26 = vmul.f32 %v2505_v33, %v973_v22 }
 0x120   : > { %1086 = vst [vmem:[%s2267_s25 + $0x30] sm:$0xff] %v1054_v27  ;;  %1087 = vst [vmem:[%s2267_s25 + $0x38] sm:$0xff] %v1055_v43  ;;  %v1026_v36 = vmul.f32 %v2506_v10, %v973_v22  ;;  %v1027_v16 = vmul.f32 %v2507_v52, %v973_v22  ;;  %v945_v58 = vadd.f32 %v2227_v5, %v2282_v38  ;;  %v2516_v38 = vld [vmem:[#allocation24_spill] sm:$0xff] }
 0x121   : > { %v946_v1 = vadd.f32 %v2231_v63, %v2285_v40  ;;  %v947_v9 = vadd.f32 %v2235_v15, %v2288_v41  ;;  %v948_v46 = vadd.f32 %v2239_v47, %v2291_v2  ;;  %v1056_v53 = vadd.f32 %v1024_v55, %v937_v50  ;;  %v981_v40 = vpop.permute.xlu1 %980 }
 0x122   : > { %v1057_v32 = vadd.f32 %v1025_v26, %v938_v51  ;;  %v1058_v3 = vadd.f32 %v1026_v36, %v939_v25  ;;  %v1059_v62 = vadd.f32 %v1027_v16, %v940_v11  ;;  %v834_v19 = vadd.f32 %v802_v45, %v2513_v42 }
 0x123   : > { %v835_v23 = vadd.f32 %v803_v8, %v2514_v34  ;;  %v836_v5 = vadd.f32 %v804_v29, %v2515_v31  ;;  %v837_v63 = vadd.f32 %v805_v0, %v2516_v38  ;;  %1088 = vst [vmem:[%s2267_s25 + $0x40] sm:$0xff] %v1056_v53  ;;  %v1032_v15 = vmul.f32 %v2504_v60, %v981_v40 }
 0x124   : > { %1089 = vst [vmem:[%s2267_s25 + $0x48] sm:$0xff] %v1057_v32  ;;  %1090 = vst [vmem:[%s2267_s25 + $0x50] sm:$0xff] %v1058_v3  ;;  %v1033_v47 = vmul.f32 %v2505_v33, %v981_v40  ;;  %v1034_v41 = vmul.f32 %v2506_v10, %v981_v40  ;;  %v1035_v2 = vmul.f32 %v2507_v52, %v981_v40 }
 0x125   : > { %1091 = vst [vmem:[%s2267_s25 + $0x58] sm:$0xff] %v1059_v62  ;;  %v1064_v59 = vadd.f32 %v1032_v15, %v945_v58  ;;  %v989_v56 = vpop.permute.xlu1 %988  ;;  %v953_v61 = vadd.f32 %v2253_v54, %v834_v19  ;;  %v954_v18 = vadd.f32 %v2517_v37, %v835_v23  ;;  %v955_v35 = vadd.f32 %v2518_v17, %v836_v5 }
 0x126   : > { %v1065_v7 = vadd.f32 %v1033_v47, %v946_v1  ;;  %v1066_v6 = vadd.f32 %v1034_v41, %v947_v9  ;;  %v1067_v14 = vadd.f32 %v1035_v2, %v948_v46  ;;  %v956_v12 = vadd.f32 %v2519_v4, %v837_v63 }
 0x127   : > { %1096 = vst [vmem:[%s2267_s25 + $0x80] sm:$0xff] %v1064_v59  ;;  %v1040_v44 = vmul.f32 %v2504_v60, %v989_v56  ;;  %v1041_v20 = vmul.f32 %v2505_v33, %v989_v56  ;;  %v1042_v54 = vmul.f32 %v2506_v10, %v989_v56  ;;  %v1043_v57 = vmul.f32 %v2507_v52, %v989_v56 }
 0x128   : > { %1097 = vst [vmem:[%s2267_s25 + $0x88] sm:$0xff] %v1065_v7  ;;  %1098 = vst [vmem:[%s2267_s25 + $0x90] sm:$0xff] %v1066_v6 }
 0x129   : > { %1099 = vst [vmem:[%s2267_s25 + $0x98] sm:$0xff] %v1067_v14  ;;  %v1072_v24 = vadd.f32 %v1040_v44, %v953_v61  ;;  %v1073_v21 = vadd.f32 %v1041_v20, %v954_v18  ;;  %v1074_v60 = vadd.f32 %v1042_v54, %v955_v35  ;;  %v1075_v39 = vadd.f32 %v1043_v57, %v956_v12 }
 0x12b   : > { %1104 = vst [vmem:[%s2267_s25 + $0xc0] sm:$0xff] %v1072_v24  ;;  %1105 = vst [vmem:[%s2267_s25 + $0xc8] sm:$0xff] %v1073_v21 }
 0x12c   : > { %1106 = vst [vmem:[%s2267_s25 + $0xd0] sm:$0xff] %v1074_v60  ;;  %1107 = vst [vmem:[%s2267_s25 + $0xd8] sm:$0xff] %v1075_v39 }
 0x12d   : > { %1289 = shalt.err (!%p1286_p3)
}
 0x12e   : > { %s1290_s7 = scalar_lea.hbm %s2406_s29, 4096  ;;  %s1294_s16 = scalar_lea.hbm %s2458_s2, 8192 }
 0x12f   : > { %p1291_p4 = scmp.ne.s32.totalorder %s2406_s29, %s1290_s7  ;;  %p1295_p9 = scmp.lt.s32.totalorder %s2406_s29, %s2458_s2 }
 0x130   : > { %p1296_p10 = scmp.lt.s32.totalorder %s1294_s16, %s1290_s7 }
 0x131   : > { %p1292_p7 = pnand %p1291_p4, %p1402_p5 }
 0x132   : > { %p1297_p11 = por %p1296_p10, %p1295_p9 }
 0x133   : > { %p1293_p8 = pneg %p1292_p7 }
 0x135   : > { %p1298_p12 = pnand %p1297_p11, %p1293_p8 }
 0x137   : > { %1301 = shalt.err (!%p1298_p12)
}
 0x138   : > { %s1347_s22 = smov 512   ;;  %s1348_s23 = smov 32  }
 0x139   : > { %1211 = dma.vmem_to_hbm [thread:$0]  (%p1402_p5), %s2408_s27, 4096, %s2406_s29, %s2416_s30, %s1347_s22, %s1347_s22, %s1348_s23  }
 0x13a PF: > { %p1217_p13 = scmp.ge.s32.totalorder %s1336_s12, 2  ;;  %s1142_s24 = sand.u32 1, %s1324_s9  }
 0x13b   : > { %s1143_s25 = scalar_lea.sflag [#allocation3], %s1142_s24 }
 0x13c   : > { %p1214_p0 = pnand %p1217_p13, %p1406_p6 }
 0x13e   : > { %p1215_p1 = pneg %p1214_p0 }
 0x140   : > { %1319 = dma.done.wait (%p1215_p1), %s1143_s25, 4096  }
 0x141   : > { %1321 = vsyncadd (%p1215_p1), %s1143_s25, 4294963200  ;;  %p12_p2 = scmp.ge.s32.totalorder %s1389_s15, 4   ;;  %s2520_s9 = smov %s1328_s10 }
 0x142   : > { %s2521_s10 = smov %s1332_s11  ;;  %s2522_s11 = smov %s1400_s18 }
 0x143   : > { %s2523_s12 = smov %s1389_s15  ;;  %14 = sbr.rel (!%p12_p2) target bundleno = 3 (0x3), region = 70 }
 0x148   :  { %1148 = vsyncpa [#allocation3], 1 }
 0x149   :  { %1150 = vsyncpa [#allocation3 + $0x1], 1 }

</bundles_post_ra>
